<compile_context>
chip_gen: v6e
topology: v6e:2x2x1
jax: 0.10.0
libtpu: 0.0.40
codegen_flags: <defaults>
</compile_context>

<pallas_src>
import functools

import jax
import jax.numpy as jnp
from jax.experimental import pallas as pl
from jax.experimental.pallas import tpu as pltpu


# ----------------------------------------------------------------------------
# Pallas kernel
# ----------------------------------------------------------------------------
def _abn_kernel(x_ref, sb_ref, o_ref, *, activation, slope):
    """One (row-tile, col-tile) block of the flattened (N*C, H*W) view.

    x_ref:  (TR, TL)  input tile (lane dim = spatial)
    sb_ref: (TR, 2)   packed per-row folded BN params: [:,0]=scale, [:,1]=bias
    o_ref:  (TR, TL)  output tile
    """
    scale = sb_ref[:, 0:1]                      # (TR, 1), broadcast along lanes
    bias = sb_ref[:, 1:2]
    y = x_ref[...].astype(jnp.float32) * scale + bias
    if activation == "relu":
        y = jnp.maximum(y, 0.0)
    elif activation == "leaky_relu":
        y = jnp.where(y >= 0.0, y, jnp.float32(slope) * y)
    elif activation == "elu":
        # PyTorch F.elu default alpha=1.0.  Clamp expm1's arg to <=0 so padded
        # garbage rows in a ragged last tile can't overflow to inf (values are
        # masked on writeback anyway; result for valid rows is unchanged).
        y = jnp.where(y >= 0.0, y, jnp.expm1(jnp.minimum(y, 0.0)))
    # activation == 'none' / 'identity': passthrough
    o_ref[...] = y.astype(o_ref.dtype)


# ----------------------------------------------------------------------------
# Generation-aware VMEM budgeting & tiling
# ----------------------------------------------------------------------------
def _cdiv(a, b):
    return (a + b - 1) // b


def _vmem_plan():
    """Returns (working_set_bytes, vmem_limit_bytes) for the current chip."""
    try:
        phys = int(pltpu.get_tpu_info().vmem_capacity_bytes)
    except Exception:
        phys = 64 << 20                       # conservative (v7x-sized) fallback
    # x in + x out, double-buffered, plus the packed scale/bias block must fit
    # in `working`.  ~1/2 of physical VMEM, capped so 128 MiB chips don't
    # over-grow tiles for no benefit.
    working = min(phys // 2, 64 << 20)        # v7x: 32 MiB, v5e/v6e: 64 MiB
    # Explicit scoped-VMEM limit (scoped defaults are only 16 MiB v5e / 32 MiB
    # v6e,v7x); keep clear headroom under physical capacity.
    limit = min(phys - (12 << 20), working + (16 << 20))
    return working, limit


def _per_row_bytes(tl, x_bytes):
    # x in + x out over TL lanes, plus the packed (row, 2) f32 scale/bias block
    # which pads to 128 lanes; everything double-buffered.
    return 2 * (2 * tl * x_bytes + 128 * 4)


def _pick_col_tile(hw, x_bytes, working_bytes):
    """Prefer TL == HW (contiguous bursts). Only split columns (multiples of
    128 dividing HW) when even an 8-row full-width stripe exceeds the budget."""
    def fits8(tl):
        return 8 * _per_row_bytes(tl, x_bytes) <= working_bytes

    if fits8(hw) or hw % 128 != 0:
        # TODO(synk): HW not a multiple of 128 -> lane-masked stores; pad the
        # spatial dim once in HBM (or fuse ABN into the producer) for those layers.
        return hw
    best = 128
    t = 128
    while t <= hw:
        if hw % t == 0 and fits8(t):
            best = t
        t += 128
    return best


def _pick_row_tile(r, tl, x_bytes, working_bytes):
    """Largest multiple-of-8 row tile whose double-buffered working set fits."""
    max_rows = max(8, working_bytes // _per_row_bytes(tl, x_bytes))
    r_rounded = ((r + 7) // 8) * 8
    tr = min(max_rows, r_rounded)
    return max(8, (tr // 8) * 8)


def _ensure_multicore_split(r, hw, tr, tl):
    """Guarantee >=2 blocks along a parallel grid axis (v7x has 2 TensorCores)."""
    if _cdiv(r, tr) >= 2 or _cdiv(hw, tl) >= 2:
        return tr, tl
    if r > 8:
        half = max(8, ((tr // 2 + 7) // 8) * 8)
        if _cdiv(r, half) >= 2:
            return half, tl
    if tl % 256 == 0:
        return tr, tl // 2
    return tr, tl


# ----------------------------------------------------------------------------
# Wrapper
# ----------------------------------------------------------------------------
def abn_pallas(x_nchw, gamma, beta, running_mean, running_var,
               eps=1e-5, activation="leaky_relu", slope=0.01):
    """x_nchw: (N, C, H, W). Returns (N, C, H, W) = activation(batchnorm_eval(x))."""
    N, C, H, W = x_nchw.shape
    HW = H * W
    R = N * C

    # --- fold BN (eval mode) into per-channel scale/bias -------------------
    inv_std = jax.lax.rsqrt(running_var.astype(jnp.float32) + jnp.float32(eps))
    if gamma is not None:
        scale_c = gamma.astype(jnp.float32) * inv_std
        bias_c = beta.astype(jnp.float32) - running_mean.astype(jnp.float32) * scale_c
    else:
        scale_c = inv_std
        bias_c = -running_mean.astype(jnp.float32) * inv_std

    # row r = n*C + c -> channel c = r % C; pack [scale, bias] into one array.
    sb_c = jnp.stack([scale_c, bias_c], axis=-1)                  # (C, 2)
    sb_rows = jnp.broadcast_to(sb_c[None], (N, C, 2)).reshape(R, 2)

    # free (contiguous) reshape: lane dim = spatial, no transpose, no pad
    x2d = x_nchw.reshape(R, HW)
    x_bytes = x2d.dtype.itemsize

    working, vmem_limit = _vmem_plan()
    TL = _pick_col_tile(HW, x_bytes, working)
    TR = _pick_row_tile(R, TL, x_bytes, working)
    TR, TL = _ensure_multicore_split(R, HW, TR, TL)
    grid = (_cdiv(R, TR), _cdiv(HW, TL))

    kernel = functools.partial(_abn_kernel, activation=activation, slope=slope)

    out2d = pl.pallas_call(
        kernel,
        out_shape=jax.ShapeDtypeStruct((R, HW), x_nchw.dtype),
        grid_spec=pltpu.PrefetchScalarGridSpec(
            num_scalar_prefetch=0,
            grid=grid,
            in_specs=[
                pl.BlockSpec((TR, TL), lambda i, j: (i, j)),
                pl.BlockSpec((TR, 2), lambda i, j: (i, 0)),   # constant along j -> no re-DMA
            ],
            out_specs=pl.BlockSpec((TR, TL), lambda i, j: (i, j)),
        ),
        compiler_params=pltpu.CompilerParams(
            dimension_semantics=("parallel", "parallel"),
            vmem_limit_bytes=int(vmem_limit),
        ),
    )(x2d, sb_rows)

    return out2d.reshape(N, C, H, W)


# ----------------------------------------------------------------------------
# Module-style wrapper mirroring the PyTorch ABN API
# ----------------------------------------------------------------------------
class ABN:
    """Activated Batch Normalization (eval-mode BatchNorm2d + activation)."""

    def __init__(self, num_features, eps=1e-5, momentum=0.1, affine=True,
                 activation="leaky_relu", slope=0.01):
        self.num_features = num_features
        self.eps = eps
        self.momentum = momentum            # unused in eval mode
        self.affine = affine
        self.activation = activation
        self.slope = slope
        self.training = False               # TODO(synk): training-mode not implemented
        if affine:
            self.weight = jnp.ones((num_features,), jnp.float32)
            self.bias = jnp.zeros((num_features,), jnp.float32)
        else:
            self.weight = None
            self.bias = None
        self.running_mean = jnp.zeros((num_features,), jnp.float32)
        self.running_var = jnp.ones((num_features,), jnp.float32)

    def __call__(self, x):
        return abn_pallas(x, self.weight, self.bias,
                          self.running_mean, self.running_var,
                          eps=self.eps, activation=self.activation,
                          slope=self.slope)


# ----------------------------------------------------------------------------
# Pure-JAX reference (eval-mode batch_norm + activation)
# ----------------------------------------------------------------------------
def _reference(x, gamma, beta, mean, var, eps, activation, slope):
    inv_std = 1.0 / jnp.sqrt(var + eps)
    g = gamma if gamma is not None else jnp.ones_like(var)
    b = beta if beta is not None else jnp.zeros_like(var)
    y = (x - mean[None, :, None, None]) * (g * inv_std)[None, :, None, None] \
        + b[None, :, None, None]
    if activation == "relu":
        return jnp.maximum(y, 0.0)
    if activation == "leaky_relu":
        return jnp.where(y >= 0.0, y, slope * y)
    if activation == "elu":
        return jnp.where(y >= 0.0, y, jnp.expm1(y))
    return y


if __name__ == "__main__":
    key = jax.random.PRNGKey(0)
    kx, kg, kb, km, kv, kx2 = jax.random.split(key, 6)

    # ---- main check: default leaky_relu, (2, 4, 16, 16) --------------------
    N, C, H, W = 2, 4, 16, 16
    x = jax.random.normal(kx, (N, C, H, W), jnp.float32)

    abn = ABN(C)  # default activation='leaky_relu', slope=0.01
    abn.weight = 1.0 + 0.1 * jax.random.normal(kg, (C,), jnp.float32)
    abn.bias = 0.1 * jax.random.normal(kb, (C,), jnp.float32)
    abn.running_mean = 0.2 * jax.random.normal(km, (C,), jnp.float32)
    abn.running_var = 1.0 + 0.1 * jnp.abs(jax.random.normal(kv, (C,), jnp.float32))

    out = jax.block_until_ready(abn(x))
    ref = _reference(x, abn.weight, abn.bias, abn.running_mean, abn.running_var,
                     abn.eps, abn.activation, abn.slope)
    assert out.shape == (N, C, H, W)
    assert jnp.allclose(out, ref, atol=1e-5, rtol=1e-5), \
        float(jnp.max(jnp.abs(out - ref)))

    # ---- secondary check: ragged row count (N*C=3 < 8) + elu ---------------
    x2 = jax.random.normal(kx2, (1, 3, 16, 16), jnp.float32)
    abn2 = ABN(3, activation="elu")
    abn2.running_mean = 0.1 * jnp.arange(3, dtype=jnp.float32)
    abn2.running_var = 1.0 + 0.05 * jnp.arange(3, dtype=jnp.float32)
    out2 = jax.block_until_ready(abn2(x2))
    ref2 = _reference(x2, abn2.weight, abn2.bias, abn2.running_mean,
                      abn2.running_var, abn2.eps, abn2.activation, abn2.slope)
    assert jnp.allclose(out2, ref2, atol=1e-5, rtol=1e-5), \
        float(jnp.max(jnp.abs(out2 - ref2)))

    print("KERNEL_OK")
</pallas_src>

<mosaic_0001>
module attributes {stable_mosaic.version = 11 : i64} {
  func.func @_abn_kernel(%arg0: i32, %arg1: i32, %arg2: memref<8x128xf32, #tpu.memory_space<vmem>>, %arg3: memref<8x2xf32, #tpu.memory_space<vmem>>, %arg4: memref<8x128xf32, #tpu.memory_space<vmem>>) attributes {dimension_semantics = [#tpu.dimension_semantics<parallel>, #tpu.dimension_semantics<parallel>], iteration_bounds = array<i64: 1, 2>, scalar_prefetch = 0 : i64, scratch_operands = 0 : i64, tpu.core_type = #tpu.core_type<tc>, window_params = [{transform_indices = @transform_0, window_bounds = array<i64: 8, 128>}, {transform_indices = @transform_1, window_bounds = array<i64: 8, 2>}, {transform_indices = @transform_2, window_bounds = array<i64: 8, 128>}]} {
    %c0 = arith.constant 0 : index
    %c0_0 = arith.constant 0 : index
    %0 = vector.load %arg3[%c0, %c0_0] : memref<8x2xf32, #tpu.memory_space<vmem>>, vector<8x1xf32>
    %c0_1 = arith.constant 0 : index
    %c1 = arith.constant 1 : index
    %1 = vector.load %arg3[%c0_1, %c1] : memref<8x2xf32, #tpu.memory_space<vmem>>, vector<8x1xf32>
    %c0_2 = arith.constant 0 : index
    %c0_3 = arith.constant 0 : index
    %2 = vector.load %arg2[%c0_2, %c0_3] : memref<8x128xf32, #tpu.memory_space<vmem>>, vector<8x128xf32>
    %3 = vector.broadcast %0 : vector<8x1xf32> to vector<8x128xf32>
    %4 = arith.mulf %2, %3 : vector<8x128xf32>
    %5 = vector.broadcast %1 : vector<8x1xf32> to vector<8x128xf32>
    %6 = arith.addf %4, %5 : vector<8x128xf32>
    %cst = arith.constant 0.000000e+00 : f32
    %7 = vector.broadcast %cst : f32 to vector<8x128xf32>
    %8 = arith.cmpf oge, %6, %7 : vector<8x128xf32>
    %cst_4 = arith.constant 0.00999999977 : f32
    %9 = vector.broadcast %cst_4 : f32 to vector<8x128xf32>
    %10 = arith.mulf %9, %6 : vector<8x128xf32>
    %11 = arith.select %8, %6, %10 : vector<8x128xi1>, vector<8x128xf32>
    %c0_5 = arith.constant 0 : index
    %c0_6 = arith.constant 0 : index
    %12 = vector.load %arg4[%c0_5, %c0_6] : memref<8x128xf32, #tpu.memory_space<vmem>>, vector<8x128xf32>
    tpu.vector_store %arg4[%c0_5, %c0_6], %11 {strides = array<i32>} : memref<8x128xf32, #tpu.memory_space<vmem>>, vector<8x128xf32>,
    return
  }
  func.func @transform_0(%arg0: i32, %arg1: i32) -> (i32, i32) {
    %c0_i32 = arith.constant 0 : i32
    return %arg0, %arg1 : i32, i32
  }
  func.func @transform_1(%arg0: i32, %arg1: i32) -> (i32, i32) {
    %c0_i32 = arith.constant 0 : i32
    %c0_i32_0 = arith.constant 0 : i32
    return %arg0, %c0_i32 : i32, i32
  }
  func.func @transform_2(%arg0: i32, %arg1: i32) -> (i32, i32) {
    %c0_i32 = arith.constant 0 : i32
    return %arg0, %arg1 : i32, i32
  }
}

</mosaic_0001>

<bundles_post_ra>
// kernel: tpu_custom_call.1
= control target key start
LH: loop header
LB: loop body
LE: loop exit
PB: predicated region body
PF: predicated region fallthrough
CT: control target
= control target key end

     0   :  { %7 = vsyncpa [#allocation3], 0  ;;  %s676_s0 = inlined_call_operand.hbm [shape: f32[8,256], index: 0, kind: input, shape index: {}]   ;;  %s677_s1 = inlined_call_operand.vmem [shape: f32[8,2], index: 1, kind: input, shape index: {}]   ;;  %s678_s2 = inlined_call_operand.hbm [shape: f32[8,256], index: 2, kind: output, shape index: {}]  }
   0x1   :  { %9 = vsyncpa [#allocation3 + $0x1], 0 }
   0x2   :  { %10 = vsyncpa [#allocation4], 0 }
   0x3   :  { %12 = vsyncpa [#allocation4 + $0x1], 0  ;;  %s533_s9 = smov 0   ;;  %s535_s10 = smov 0  }
   0x4   :  { %s537_s11 = smov 0   ;;  %s539_s12 = smov 0  }
   0x5   :  { %s541_s13 = smov 0   ;;  %s543_s14 = smov 0  }
   0x6 LB: > { %s324_s15 = sadd.s32 4294967295, %s512_s14   ;;  %s325_s16 = sadd.s32 4294967294, %s512_s14   ;;  %s512_s14 = sphi %s543_s14, %s18_s14   ;;  %s508_s13 = sphi %s541_s13, %s690_s13   ;;  %s504_s12 = sphi %s539_s12, %s689_s12   ;;  %s500_s11 = sphi %s537_s11, %s688_s11   ;;  %s496_s10 = sphi %s535_s10, %s687_s10   ;;  %s492_s9 = sphi %s533_s9, %s686_s9  }
   0x7   : > { %s27_s17 = sadd.s32 1, %s508_s13  ;;  %s39_s18 = sadd.s32 1, %s500_s11 }
   0x8   : > { %p28_p0 = scmp.ge.s32.totalorder %s27_s17, 2  ;;  %p46_p1 = scmp.ne.s32.totalorder %s500_s11, %s496_s10 }
   0x9   : > { %p47_p2 = scmp.eq.s32.totalorder %s512_s14, 0  ;;  %p52_p3 = scmp.ne.s32.totalorder %s496_s10, %s492_s9 }
   0xa   : > { %s692_s17 = smov (%p28_p0, %s27_s17), 0  ;;  %p53_p5 = scmp.eq.s32.totalorder %s324_s15, 0 }
   0xb   : > { %p574_p4 = por %p47_p2, %p46_p1  ;;  %s35_s20 = ssub.s32 %s508_s13, %s692_s17 }
   0xc   : > { %p104_p6 = scmp.eq.s32.totalorder %s324_s15, 1  ;;  %p37_p7 = scmp.eq.s32.totalorder %s35_s20, 0 }
   0xd   : > { %p580_p8 = por %p53_p5, %p52_p3  ;;  %p110_p10 = scmp.eq.s32.totalorder %s325_s16, 1 }
   0xe   : > { %p584_p9 = por %p104_p6, %p46_p1  ;;  %p350_p13 = scmp.lt.s32.totalorder %s512_s14, 2 }
   0xf   : > { %s589_s23 = scalar_select %p37_p7, %s500_s11, %s39_s18  }
  0x10   : > { %p591_p11 = por %p110_p10, %p52_p3  ;;  %s137_s25 = sand.u32 1, %s500_s11  }
  0x11   : > { %s329_s26 = sshll.u32 %s137_s25, 3  ;;  %s330_s27 = sshll.u32 %s508_s13, 7 }
  0x12   : > { %s682_s24 = scalar_select %p591_p11, 1, 0 }
  0x13   : > { %s148_s30 = scalar_lea.hbm %s676_s0, %s330_s27  ;;  %s141_s3 = scalar_lea.vmem [#allocation2], %s329_s26 }
  0x14   : > { %s150_s4 = sshll.u32 %s141_s3, 4  ;;  %p604_p0 = pnand %p350_p13, %p574_p4  ;;  %s151_s4 = int_to_ptr.vmem [resolvable:$true] %s150_s4 }
  0x15   : > { %p331_p1 = scmp.ge.s32.totalorder %s512_s14, 1  ;;  %p155_p2 = scmp.lt.s32.totalorder %s512_s14, 3 }
  0x16   : > { %s138_s6 = scalar_lea.sflag [#allocation3], %s137_s25  ;;  %p406_p3 = pneg %p604_p0 }
  0x17   : > { %s417_s7 = scalar_lea.vmem %s151_s4, 128  ;;  %s514_s8 = smov [#allocation2]  }
  0x18   : > { %p418_p5 = scmp.ne.s32.totalorder %s151_s4, %s417_s7  ;;  %s422_s15 = sshll.u32 %s514_s8, 4  ;;  %s423_s15 = int_to_ptr.vmem [resolvable:$false] %s422_s15 }
  0x19   : > { %s424_s16 = scalar_lea.vmem %s423_s15, 256  ;;  %p425_p10 = scmp.lt.s32.totalorder %s151_s4, %s423_s15 }
  0x1a   : > { %p420_p6 = pnand %p418_p5, %p406_p3  ;;  %p426_p12 = scmp.lt.s32.totalorder %s424_s16, %s417_s7 }
  0x1c   : > { %p421_p7 = pneg %p420_p6  ;;  %p427_p4 = por %p426_p12, %p425_p10 }
  0x1e   : > { %p428_p13 = pnand %p427_p4, %p421_p7 }
  0x20   : > { %431 = shalt.err (!%p428_p13)
}
  0x21   : > { %345 = dma.hbm_to_vmem [thread:$0]  (!%p604_p0), %s148_s30, 128, %s151_s4, %s138_s6  }
  0x22   : > { %p156_p11 = pnand %p331_p1, %p155_p2 }
  0x23   : > { %s619_s18 = sand.u32 (!%p156_p11), 1, %s496_s10  }
  0x24   : > { %159 = sbr.rel (%p156_p11) target bundleno = 191 (0xbf), region = 28  ;;  %s332_s19 = sshll.u32 (!%p156_p11), %s619_s18, 3 }
  0x25   : > { %s162_s20 = scalar_lea.sflag (!%p156_p11), [#allocation3], %s619_s18  ;;  %s165_s25 = scalar_lea.vmem (!%p156_p11), [#allocation2], %s332_s19 }
  0x29   : > { %483 = dma.done.wait (%p580_p8), %s162_s20, 128  }
  0x2a   : > { %485 = vsyncadd (%p580_p8), %s162_s20, 4294967168  ;;  %v515_v0 = vmov 0   ;;  %v194_v1 = vld [vmem:[%s677_s1] sm:$0xff]  ;;  %v516_v2 = vmov 1   ;;  %s335_s21 = sshll.u32 %s504_s12, 7  ;;  %s189_s28 = scalar_lea.vmem [#allocation5], %s332_s19 }
  0x2b   : > { %402 = vset.pattern.permute.xlu0 %v515_v0  ;;  %v195_v4 = vld [vmem:[%s165_s25] sm:$0xff]  ;;  %s227_s29 = sshll.u32 %s189_s28, 4  ;;  %s634_s4 = scalar_lea.hbm %s678_s2, %s335_s21  ;;  %s228_s29 = int_to_ptr.vmem [resolvable:$true] %s227_s29 }
  0x2c   : > { %198 = vperm.xlu0 %402, %v194_v1   ;;  %s212_s5 = scalar_lea.sflag [#allocation4], %s619_s18  ;;  %s432_s6 = scalar_lea.vmem %s228_s29, 128 }
  0x2d   : > { %p433_p8 = scmp.ne.s32.totalorder %s228_s29, %s432_s6  ;;  %s517_s7 = smov [#allocation5]  }
  0x2e   : > { %s436_s12 = sshll.u32 %s517_s7, 4  ;;  %s437_s12 = int_to_ptr.vmem [resolvable:$false] %s436_s12 }
  0x2f   : > { %p434_p11 = pnand %p433_p8, %p584_p9  ;;  %s438_s8 = scalar_lea.vmem %s437_s12, 256 }
  0x30   : > { %403 = vset.pattern.permute.xlu0 %v516_v2  ;;  %p439_p0 = scmp.lt.s32.totalorder %s228_s29, %s437_s12  ;;  %p440_p1 = scmp.lt.s32.totalorder %s438_s8, %s432_s6 }
  0x31   : > { %203 = vperm.xlu0 %403, %v194_v1   ;;  %p435_p12 = pneg %p434_p11 }
  0x32   : > { %p441_p2 = por %p440_p1, %p439_p0 }
  0x34   : > { %p442_p3 = pnand %p441_p2, %p435_p12 }
  0xa7   : > { %v199_v3 = vpop.permute.xlu0 %198 }
  0xa8   : > { %v201_v5 = vmul.f32 %v199_v3, %v195_v4 }
  0xac   : > { %v204_v6 = vpop.permute.xlu0 %203 }
  0xad   : > { %v206_v7 = vadd.f32 %v204_v6, %v201_v5 }
  0xaf   : > { %vm207_vm0 = vcmp.ge.f32.partialorder %v206_v7, 0.0  ;;  %v208_v8 = vmul.f32 0.01, %v206_v7 }
  0xb1   : > { %v209_v9 = vsel %vm207_vm0, %v206_v7, %v208_v8 }
  0xb2   : > { %210 = vst [vmem:[%s189_s28] sm:$0xff] %v209_v9 }
  0xb3   : > { %445 = shalt.err (!%p442_p3)
}
  0xb4   : > { %s446_s15 = scalar_lea.hbm %s634_s4, 128  ;;  %s450_s19 = scalar_lea.hbm %s678_s2, 256 }
  0xb5   : > { %p447_p5 = scmp.ne.s32.totalorder %s634_s4, %s446_s15  ;;  %p451_p10 = scmp.lt.s32.totalorder %s634_s4, %s678_s2 }
  0xb6   : > { %p452_p4 = scmp.lt.s32.totalorder %s450_s19, %s446_s15 }
  0xb7   : > { %p448_p6 = pnand %p447_p5, %p584_p9 }
  0xb8   : > { %p453_p13 = por %p452_p4, %p451_p10 }
  0xb9   : > { %p449_p7 = pneg %p448_p6 }
  0xbb   : > { %p454_p8 = pnand %p453_p13, %p449_p7 }
  0xbd   : > { %457 = shalt.err (!%p454_p8)
}
  0xbe   : > { %340 = dma.vmem_to_hbm [thread:$0]  (%p584_p9), %s228_s29, 128, %s634_s4, %s212_s5  }
  0xbf PF: > { %s239_s26 = sand.u32 1, %s492_s9   ;;  %p684_p11 = scmp.ne.s32.totalorder %s682_s24, 0 }
  0xc0   : > { %p685_p12 = scmp.ge.s32.totalorder %s512_s14, 2  ;;  %s240_s27 = scalar_lea.sflag [#allocation4], %s239_s26 }
  0xc2   : > { %p347_p0 = pnand %p685_p12, %p684_p11 }
  0xc4   : > { %p348_p1 = pneg %p347_p0 }
  0xc6   : > { %487 = dma.done.wait (%p348_p1), %s240_s27, 128  }
  0xc7   : > { %489 = vsyncadd (%p348_p1), %s240_s27, 4294967168  ;;  %s18_s14 = sadd.s32 1, %s512_s14   ;;  %s686_s9 = smov %s496_s10 }
  0xc8   : > { %p15_p2 = scmp.ge.s32.totalorder %s18_s14, 4   ;;  %s687_s10 = smov %s500_s11 }
  0xc9   : > { %s688_s11 = smov %s589_s23  ;;  %s689_s12 = smov %s508_s13 }
  0xca   : > { %s690_s13 = smov %s692_s17  ;;  %17 = sbr.rel (!%p15_p2) target bundleno = 6 (0x6), region = 76 }
  0xcf   :  { %245 = vsyncpa [#allocation3], 1 }
  0xd0   :  { %247 = vsyncpa [#allocation3 + $0x1], 1 }
  0xd1   :  { %248 = vsyncpa [#allocation4], 1 }
  0xd2   :  { %250 = vsyncpa [#allocation4 + $0x1], 1 }

</bundles_post_ra>
